<compile_context>
chip_gen: v5e
topology: v5e:2x2
jax: 0.10.0
libtpu: 0.0.40
codegen_flags: <defaults>
</compile_context>

<pallas_src>
import jax
import jax.numpy as jnp
import numpy as np
from jax.experimental import pallas as pl
from jax.experimental.pallas import tpu as pltpu


def _round_up(x, m):
    return (x + m - 1) // m * m


def _bilinear_disc_kernel(cs_ref, w_ref, b_ref, h1_ref, h2_ref, h3_ref, h4_ref, o_ref):
    # v[k, i] = sum_j W[i, j] * c_k[j]   (k = 0 -> c1, k = 1 -> c2)
    v = jax.lax.dot_general(
        cs_ref[...], w_ref[...],
        dimension_numbers=(((1,), (1,)), ((), ())),
        preferred_element_type=jnp.float32,
    )  # [2, H]
    v1 = v[0:1, :]
    v2 = v[1:2, :]

    def score(v_row, h):
        # [1, H] x [tile, H] (contract H) -> [1, tile]; node dim stays lane-dense.
        return jax.lax.dot_general(
            v_row, h,
            dimension_numbers=(((1,), (1,)), ((), ())),
            preferred_element_type=jnp.float32,
        )

    sc1 = score(v1, h2_ref[...])   # f_k(h2, c1)
    sc2 = score(v2, h1_ref[...])   # f_k(h1, c2)
    sc3 = score(v1, h4_ref[...])   # f_k(h4, c1)
    sc4 = score(v2, h3_ref[...])   # f_k(h3, c2)

    o_ref[...] = jnp.concatenate([sc1, sc2, sc3, sc4], axis=0) + b_ref[0, 0]


def discriminator_forward(weight, bias, c1, c2, h1, h2, h3, h4,
                          s_bias1=None, s_bias2=None, *, tm=512):
    """Fused Discriminator forward. Returns logits of shape [4 * N].

    `weight` is the torch Bilinear weight ([1, n_h, n_h] or [n_h, n_h]),
    `bias` its bias ([1] or scalar). s_bias1/s_bias2 are accepted but unused,
    matching the PyTorch forward. `tm` (node tile) must be a multiple of 128
    when N > tm.
    """
    del s_bias1, s_bias2  # unused by the original forward

    w = jnp.asarray(weight, jnp.float32)
    if w.ndim == 3:
        w = w[0]
    b = jnp.asarray(bias, jnp.float32).reshape(1, 1)
    c1 = jnp.asarray(c1, jnp.float32)
    c2 = jnp.asarray(c2, jnp.float32)
    cs = jnp.stack([c1, c2], axis=0)                       # [2, H]

    n, nh = h1.shape
    if n > tm:
        assert tm % 128 == 0, "node tile must be a multiple of 128 when tiling"
        tile = tm
    else:
        tile = _round_up(n, 8)
    n_pad = _round_up(n, tile)
    pad = n_pad - n

    def prep(h):
        h = jnp.asarray(h, jnp.float32)
        if pad:
            h = jnp.pad(h, ((0, pad), (0, 0)))
        return h

    h1, h2, h3, h4 = prep(h1), prep(h2), prep(h3), prep(h4)

    const2 = lambda i: (0, 0)
    h_spec = pl.BlockSpec((tile, nh), lambda i: (i, 0))

    out = pl.pallas_call(
        _bilinear_disc_kernel,
        out_shape=jax.ShapeDtypeStruct((4, n_pad), jnp.float32),
        grid=(n_pad // tile,),
        in_specs=[
            pl.BlockSpec((2, nh), const2),    # [c1; c2]
            pl.BlockSpec((nh, nh), const2),   # bilinear weight
            pl.BlockSpec((1, 1), const2),     # bilinear bias
            h_spec, h_spec, h_spec, h_spec,   # h1..h4 node tiles
        ],
        out_specs=pl.BlockSpec((4, tile), lambda i: (0, i)),
        compiler_params=pltpu.CompilerParams(
            dimension_semantics=("parallel",),
        ),
    )(cs, w, b, h1, h2, h3, h4)

    # rows of `out` are sc_1, sc_2, sc_3, sc_4 -> flatten == torch.cat(..., 0)
    return out[:, :n].reshape(-1)


def discriminator_reference(weight, bias, c1, c2, h1, h2, h3, h4):
    """Pure-JAX replica of the PyTorch Discriminator.forward (eval semantics)."""
    w = weight[0] if weight.ndim == 3 else weight
    b = jnp.reshape(jnp.asarray(bias, jnp.float32), ())

    def f_k(x1, x2):
        return jnp.einsum("ni,ij,nj->n", x1, w, x2) + b

    cx1 = jnp.broadcast_to(c1, h1.shape)
    cx2 = jnp.broadcast_to(c2, h2.shape)
    sc_1 = f_k(h2, cx1)
    sc_2 = f_k(h1, cx2)
    sc_3 = f_k(h4, cx1)
    sc_4 = f_k(h3, cx2)
    return jnp.concatenate([sc_1, sc_2, sc_3, sc_4], axis=0)


if __name__ == "__main__":
    key = jax.random.PRNGKey(0)

    def make_case(key, n, nh):
        ks = jax.random.split(key, 7)
        # torch.nn.init.xavier_uniform_ on a [1, nh, nh] Bilinear weight:
        # fan_in = nh*nh, fan_out = nh
        lim = float(np.sqrt(6.0 / (nh * nh + nh)))
        w = jax.random.uniform(ks[0], (1, nh, nh), jnp.float32, -lim, lim)
        b = jnp.zeros((1,), jnp.float32)   # bias.data.fill_(0.0)
        c1 = jax.random.normal(ks[1], (nh,), jnp.float32)
        c2 = jax.random.normal(ks[2], (nh,), jnp.float32)
        h1 = jax.random.normal(ks[3], (n, nh), jnp.float32)
        h2 = jax.random.normal(ks[4], (n, nh), jnp.float32)
        h3 = jax.random.normal(ks[5], (n, nh), jnp.float32)
        h4 = jax.random.normal(ks[6], (n, nh), jnp.float32)
        return w, b, c1, c2, h1, h2, h3, h4

    k1, k2 = jax.random.split(key)

    # Case 1: small single-tile problem (N=8 nodes, n_h=32).
    args = make_case(k1, n=8, nh=32)
    logits = jax.block_until_ready(discriminator_forward(*args))
    ref = discriminator_reference(*args)
    np.testing.assert_allclose(np.asarray(logits), np.asarray(ref),
                               rtol=1e-4, atol=1e-5)

    # Case 2: exercises the tiled path (multiple node tiles + padding).
    args = make_case(k2, n=300, nh=64)
    logits = jax.block_until_ready(discriminator_forward(*args, tm=128))
    ref = discriminator_reference(*args)
    np.testing.assert_allclose(np.asarray(logits), np.asarray(ref),
                               rtol=1e-4, atol=1e-5)

    print("KERNEL_OK")
</pallas_src>

<mosaic_0001>
module attributes {stable_mosaic.version = 11 : i64} {
  func.func @_bilinear_disc_kernel(%arg0: i32, %arg1: memref<2x32xf32, #tpu.memory_space<vmem>>, %arg2: memref<32x32xf32, #tpu.memory_space<vmem>>, %arg3: memref<1x1xf32, #tpu.memory_space<vmem>>, %arg4: memref<8x32xf32, #tpu.memory_space<vmem>>, %arg5: memref<8x32xf32, #tpu.memory_space<vmem>>, %arg6: memref<8x32xf32, #tpu.memory_space<vmem>>, %arg7: memref<8x32xf32, #tpu.memory_space<vmem>>, %arg8: memref<4x8xf32, #tpu.memory_space<vmem>>) attributes {dimension_semantics = [#tpu.dimension_semantics<parallel>], iteration_bounds = array<i64: 1>, scalar_prefetch = 0 : i64, scratch_operands = 0 : i64, tpu.core_type = #tpu.core_type<tc>, window_params = [{pipeline_mode = #tpu.pipeline_mode<synchronous>, transform_indices = @transform_0, window_bounds = array<i64: 2, 32>}, {pipeline_mode = #tpu.pipeline_mode<synchronous>, transform_indices = @transform_1, window_bounds = array<i64: 32, 32>}, {pipeline_mode = #tpu.pipeline_mode<synchronous>, transform_indices = @transform_2, window_bounds = array<i64: 1, 1>}, {transform_indices = @transform_3, window_bounds = array<i64: 8, 32>}, {transform_indices = @transform_4, window_bounds = array<i64: 8, 32>}, {transform_indices = @transform_5, window_bounds = array<i64: 8, 32>}, {transform_indices = @transform_6, window_bounds = array<i64: 8, 32>}, {transform_indices = @transform_7, window_bounds = array<i64: 4, 8>}]} {
    %c0 = arith.constant 0 : index
    %c0_0 = arith.constant 0 : index
    %0 = vector.load %arg1[%c0, %c0_0] : memref<2x32xf32, #tpu.memory_space<vmem>>, vector<2x32xf32>
    %c0_1 = arith.constant 0 : index
    %c0_2 = arith.constant 0 : index
    %1 = vector.load %arg2[%c0_1, %c0_2] : memref<32x32xf32, #tpu.memory_space<vmem>>, vector<32x32xf32>
    %cst = arith.constant dense<0.000000e+00> : vector<2x32xf32>
    %2 = tpu.matmul %0, %1, %cst {dimension_numbers = #tpu.dot_dimension_numbers<[1], [1], [0], [0], [0, 0, 1, 0], [], []>} : vector<2x32xf32>, vector<32x32xf32>, vector<2x32xf32> -> vector<2x32xf32>
    %3 = vector.extract_strided_slice %2 {offsets = [0, 0], sizes = [1, 32], strides = [1, 1]} : vector<2x32xf32> to vector<1x32xf32>
    %4 = vector.extract_strided_slice %2 {offsets = [1, 0], sizes = [1, 32], strides = [1, 1]} : vector<2x32xf32> to vector<1x32xf32>
    %c0_3 = arith.constant 0 : index
    %c0_4 = arith.constant 0 : index
    %5 = vector.load %arg5[%c0_3, %c0_4] : memref<8x32xf32, #tpu.memory_space<vmem>>, vector<8x32xf32>
    %cst_5 = arith.constant dense<0.000000e+00> : vector<1x8xf32>
    %6 = tpu.matmul %3, %5, %cst_5 {dimension_numbers = #tpu.dot_dimension_numbers<[1], [1], [0], [0], [0, 0, 1, 0], [], []>} : vector<1x32xf32>, vector<8x32xf32>, vector<1x8xf32> -> vector<1x8xf32>
    %c0_6 = arith.constant 0 : index
    %c0_7 = arith.constant 0 : index
    %7 = vector.load %arg4[%c0_6, %c0_7] : memref<8x32xf32, #tpu.memory_space<vmem>>, vector<8x32xf32>
    %cst_8 = arith.constant dense<0.000000e+00> : vector<1x8xf32>
    %8 = tpu.matmul %4, %7, %cst_8 {dimension_numbers = #tpu.dot_dimension_numbers<[1], [1], [0], [0], [0, 0, 1, 0], [], []>} : vector<1x32xf32>, vector<8x32xf32>, vector<1x8xf32> -> vector<1x8xf32>
    %c0_9 = arith.constant 0 : index
    %c0_10 = arith.constant 0 : index
    %9 = vector.load %arg7[%c0_9, %c0_10] : memref<8x32xf32, #tpu.memory_space<vmem>>, vector<8x32xf32>
    %cst_11 = arith.constant dense<0.000000e+00> : vector<1x8xf32>
    %10 = tpu.matmul %3, %9, %cst_11 {dimension_numbers = #tpu.dot_dimension_numbers<[1], [1], [0], [0], [0, 0, 1, 0], [], []>} : vector<1x32xf32>, vector<8x32xf32>, vector<1x8xf32> -> vector<1x8xf32>
    %c0_12 = arith.constant 0 : index
    %c0_13 = arith.constant 0 : index
    %11 = vector.load %arg6[%c0_12, %c0_13] : memref<8x32xf32, #tpu.memory_space<vmem>>, vector<8x32xf32>
    %cst_14 = arith.constant dense<0.000000e+00> : vector<1x8xf32>
    %12 = tpu.matmul %4, %11, %cst_14 {dimension_numbers = #tpu.dot_dimension_numbers<[1], [1], [0], [0], [0, 0, 1, 0], [], []>} : vector<1x32xf32>, vector<8x32xf32>, vector<1x8xf32> -> vector<1x8xf32>
    %13 = tpu.concatenate %6, %8, %10, %12 in 0 : vector<1x8xf32>, vector<1x8xf32>, vector<1x8xf32>, vector<1x8xf32> -> vector<4x8xf32>
    %c0_15 = arith.constant 0 : index
    %c0_16 = arith.constant 0 : index
    %14 = vector.load %arg3[%c0_15, %c0_16] : memref<1x1xf32, #tpu.memory_space<vmem>>, vector<1x1xf32>
    %15 = vector.extract %14[0, 0] : f32 from vector<1x1xf32>
    %16 = vector.broadcast %15 : f32 to vector<4x8xf32>
    %17 = arith.addf %13, %16 : vector<4x8xf32>
    %c0_17 = arith.constant 0 : index
    %c0_18 = arith.constant 0 : index
    %18 = vector.load %arg8[%c0_17, %c0_18] : memref<4x8xf32, #tpu.memory_space<vmem>>, vector<4x8xf32>
    tpu.vector_store %arg8[%c0_17, %c0_18], %17 {strides = array<i32>} : memref<4x8xf32, #tpu.memory_space<vmem>>, vector<4x8xf32>,
    return
  }
  func.func @transform_0(%arg0: i32) -> (i32, i32) {
    %c0_i32 = arith.constant 0 : i32
    %c0_i32_0 = arith.constant 0 : i32
    %c0_i32_1 = arith.constant 0 : i32
    return %c0_i32, %c0_i32_0 : i32, i32
  }
  func.func @transform_1(%arg0: i32) -> (i32, i32) {
    %c0_i32 = arith.constant 0 : i32
    %c0_i32_0 = arith.constant 0 : i32
    %c0_i32_1 = arith.constant 0 : i32
    return %c0_i32, %c0_i32_0 : i32, i32
  }
  func.func @transform_2(%arg0: i32) -> (i32, i32) {
    %c0_i32 = arith.constant 0 : i32
    %c0_i32_0 = arith.constant 0 : i32
    %c0_i32_1 = arith.constant 0 : i32
    return %c0_i32, %c0_i32_0 : i32, i32
  }
  func.func @transform_3(%arg0: i32) -> (i32, i32) {
    %c0_i32 = arith.constant 0 : i32
    %c0_i32_0 = arith.constant 0 : i32
    return %arg0, %c0_i32 : i32, i32
  }
  func.func @transform_4(%arg0: i32) -> (i32, i32) {
    %c0_i32 = arith.constant 0 : i32
    %c0_i32_0 = arith.constant 0 : i32
    return %arg0, %c0_i32 : i32, i32
  }
  func.func @transform_5(%arg0: i32) -> (i32, i32) {
    %c0_i32 = arith.constant 0 : i32
    %c0_i32_0 = arith.constant 0 : i32
    return %arg0, %c0_i32 : i32, i32
  }
  func.func @transform_6(%arg0: i32) -> (i32, i32) {
    %c0_i32 = arith.constant 0 : i32
    %c0_i32_0 = arith.constant 0 : i32
    return %arg0, %c0_i32 : i32, i32
  }
  func.func @transform_7(%arg0: i32) -> (i32, i32) {
    %c0_i32 = arith.constant 0 : i32
    %c0_i32_0 = arith.constant 0 : i32
    return %c0_i32, %arg0 : i32, i32
  }
}

</mosaic_0001>

<bundles_post_ra>
// kernel: tpu_custom_call.1
= control target key start
LH: loop header
LB: loop body
LE: loop exit
PB: predicated region body
PF: predicated region fallthrough
CT: control target
= control target key end

     0   :  { %s542_s0 = inlined_call_operand.vmem [shape: f32[2,32], index: 0, kind: input, shape index: {}]   ;;  %s543_s1 = inlined_call_operand.hbm [shape: f32[32,32], index: 1, kind: input, shape index: {}]   ;;  %s544_s2 = inlined_call_operand.<no memory space> [shape: f32[1,1], index: 2, kind: input, shape index: {}]   ;;  %s545_s3 = inlined_call_operand.hbm [shape: f32[8,32], index: 3, kind: input, shape index: {}]   ;;  %s546_s4 = inlined_call_operand.hbm [shape: f32[8,32], index: 4, kind: input, shape index: {}]   ;;  %s547_s5 = inlined_call_operand.hbm [shape: f32[8,32], index: 5, kind: input, shape index: {}]   ;;  %s548_s6 = inlined_call_operand.hbm [shape: f32[8,32], index: 6, kind: input, shape index: {}]   ;;  %s549_s7 = inlined_call_operand.hbm [shape: f32[4,8], index: 7, kind: output, shape index: {}]  }
   0x1   :  { %v12_v0 = vstv %s544_s2 }
   0x2   :  { %13 = vst [vmem:[#allocation2] sm:$0x1] %v12_v0 }
   0x3   :  { %14 = vsyncpa [#allocation4], 0 }
   0x4   :  { %15 = vsyncpa [#allocation7], 0 }
   0x5   :  { %16 = vsyncpa [#allocation10], 0  ;;  %s40_s28 = sshll.u32 %s545_s3, 4  ;;  %s41_s28 = int_to_ptr.hbm [resolvable:$true] %s40_s28 }
   0x6   :  { %17 = vsyncpa [#allocation5], 0  ;;  %s457_s29 = smov [#allocation6]   ;;  %s62_s10 = sshll.u32 %s547_s5, 4  ;;  %s63_s10 = int_to_ptr.hbm [resolvable:$true] %s62_s10 }
   0x7   :  { %s42_s30 = sshll.u32 %s457_s29, 4  ;;  %s458_s2 = smov [#allocation9]   ;;  %s43_s30 = int_to_ptr.vmem [resolvable:$true] %s42_s30 }
   0x8   :  { %45 = dma.hbm_to_vmem [thread:$0]  %s41_s28, 128, %s43_s30, [#allocation7]  }
   0x9   :  { %s64_s11 = sshll.u32 %s458_s2, 4  ;;  %s24_s14 = sshll.u32 %s543_s1, 4  ;;  %s65_s11 = int_to_ptr.vmem [resolvable:$true] %s64_s11  ;;  %s25_s14 = int_to_ptr.hbm [resolvable:$true] %s24_s14 }
   0xa   :  { %67 = dma.hbm_to_vmem [thread:$0]  %s63_s10, 128, %s65_s11, [#allocation10]  }
   0xb   :  { %s459_s3 = smov [#allocation3]   ;;  %s51_s18 = sshll.u32 %s546_s4, 4  ;;  %s52_s18 = int_to_ptr.hbm [resolvable:$true] %s51_s18 }
   0xc   :  { %s26_s15 = sshll.u32 %s459_s3, 4  ;;  %s460_s19 = smov 128   ;;  %s27_s15 = int_to_ptr.vmem [resolvable:$true] %s26_s15 }
   0xd   :  { %s461_s5 = smov 8   ;;  %s462_s20 = smov [#allocation8]  }
   0xe   :  { %32 = dma.hbm_to_vmem [thread:$0]  %s25_s14, 512, %s27_s15, [#allocation4], %s460_s19, %s460_s19, %s461_s5  }
   0xf   :  { %s53_s21 = sshll.u32 %s462_s20, 4  ;;  %s73_s1 = sshll.u32 %s548_s6, 4  ;;  %s54_s21 = int_to_ptr.vmem [resolvable:$true] %s53_s21  ;;  %s74_s1 = int_to_ptr.hbm [resolvable:$true] %s73_s1 }
  0x10   :  { %56 = dma.hbm_to_vmem [thread:$0]  %s52_s18, 128, %s54_s21, [#allocation7]  }
  0x11   :  { %s463_s24 = smov [#allocation11]  }
  0x12   :  { %s75_s25 = sshll.u32 %s463_s24, 4  ;;  %s76_s25 = int_to_ptr.vmem [resolvable:$true] %s75_s25 }
  0x13   :  { %78 = dma.hbm_to_vmem [thread:$0]  %s74_s1, 128, %s76_s25, [#allocation10]  }
  0x14   :  { %449 = dma.done.wait [#allocation4], 512  }
  0x15   :  { %450 = vsyncadd [#allocation4], 4294966784 }
  0x16   :  { %451 = dma.done.wait [#allocation7], 256  }
  0x17   :  { %452 = vsyncadd [#allocation7], 4294967040 }
  0x18   :  { %453 = dma.done.wait [#allocation10], 256  }
  0x19   :  { %454 = vsyncadd [#allocation10], 4294967040  ;;  %vm104_vm0 = vcmask 261120   ;;  %v103_v1 = vld [vmem:[#allocation3 + $0x18] sm:$0xff]  ;;  %v140_v2 = vld [vmem:[#allocation8] sm:$0xff]  ;;  %vm251_vm1 = vcmask 1040384  }
  0x1a   :  { %282 = vmatpush.xpose.msk.msra.mxu0 %vm104_vm0, %v103_v1  ;;  %v102_v3 = vld [vmem:[#allocation3 + $0x10] sm:$0xff]  ;;  %287 = vmatpush.xpose.msk.msra.mxu1 %vm104_vm0, %v140_v2  ;;  %v194_v4 = vld [vmem:[#allocation11] sm:$0xff]  ;;  %v101_v5 = vld [vmem:[#allocation3 + $0x8] sm:$0xff]  ;;  %vm253_vm2 = vcmask 1041408   ;;  %vm255_vm3 = vcmask 1042432   ;;  %s464_s26 = smov [#allocation12]  }
  0x1b   :  { %291 = vmatpush.xpose.msk.msra.mxu3 %vm104_vm0, %v194_v4  ;;  %v100_v6 = vld [vmem:[#allocation3] sm:$0xff]  ;;  %v218_v9 = vld [vmem:[#allocation9] sm:$0xff]  ;;  %v257_v10 = vld [vmem:[#allocation2] sm:$0x1]  ;;  %s268_s27 = sshll.u32 %s464_s26, 4  ;;  %s270_s30 = sshll.u32 %s549_s7, 4  ;;  %s269_s27 = int_to_ptr.vmem [resolvable:$true] %s268_s27  ;;  %s271_s30 = int_to_ptr.hbm [resolvable:$true] %s270_s30 }
  0x1c   :  { %v99_v7 = vld [vmem:[%s542_s0] sm:$0x3]  ;;  %295 = vpush %v257_v10  ;;  %vm261_vm4 = vcmask 60416  }
  0x1d   :  { %v167_v8 = vld [vmem:[#allocation6] sm:$0xff] }
  0x1e   :  { %283 = vmatpush.xpose.msk.msra.mxu0 %vm104_vm0, %v102_v3  ;;  %289 = vmatpush.xpose.msk.msra.mxu2 %vm104_vm0, %v167_v8 }
  0x1f   :  { %293 = vmatpush.xpose.msk.msrb.mxu1 %vm104_vm0, %v218_v9 }
  0x22   :  { %284 = vmatpush.xpose.msk.msra.mxu0 %vm104_vm0, %v101_v5 }
  0x26   :  { %285 = vmatpush.xpose.msk.msra.mxu0 %vm104_vm0, %v100_v6 }
  0x29   :  { %286 = vmatmul.msk.f32.vlgmr.msra.gmra.mxu0 %vm104_vm0, %v99_v7 }
  0x4d   :  { %s296_s0 = spop %295 }
  0x4e   :  { %v259_v21 = vstv %s296_s0 }
  0xa6   :  { %v137_v11 = vpop.f32.mrf.mxu0 }
  0xa7   :  { %v168_v12 = vrot.slane %v137_v11, 1  ;;  %288 = vmatmul.msk.f32.vlgmr.msra.gmra.mxu1 %vm104_vm0, %v137_v11  ;;  %292 = vmatmul.msk.f32.vlgmr.msra.gmra.mxu3 %vm104_vm0, %v137_v11 }
  0xa9   :  { %290 = vmatmul.msk.f32.vlgmr.msra.gmra.mxu2 %vm104_vm0, %v168_v12 }
  0xaf   :  { %294 = vmatmul.msk.f32.vlgmr.msrb.gmra.mxu1 %vm104_vm0, %v168_v12 }
 0x124   :  { %v164_v13 = vpop.f32.mrf.mxu1 }
 0x12a   :  { %v215_v14 = vpop.f32.mrf.mxu3 }
 0x12b   :  { %v246_v18 = vrot.slane %v215_v14, 6 }
 0x12c   :  { %v191_v15 = vpop.f32.mrf.mxu2  ;;  %v239_v16 = vpop.f32.mrf.mxu1 }
 0x12d   :  { %v243_v17 = vrot.slane %v191_v15, 7  ;;  %v249_v20 = vrot.slane %v239_v16, 5 }
 0x12f   :  { %v252_v19 = vsel %vm251_vm1, %v164_v13, %v243_v17 }
 0x130   :  { %v254_v22 = vsel %vm253_vm2, %v252_v19, %v246_v18 }
 0x131   :  { %v256_v23 = vsel %vm255_vm3, %v254_v22, %v249_v20 }
 0x132   :  { %v260_v24 = vadd.f32 %v259_v21, %v256_v23 }
 0x134   :  { %262 = vst.msk [vmem:[#allocation12] sm:$0xf] %vm261_vm4, %v260_v24 }
 0x135   :  { %273 = dma.vmem_to_hbm [thread:$0]  %s269_s27, 64, %s271_s30, [#allocation5]  }
 0x136   :  { %455 = dma.done.wait [#allocation5], 64  }
 0x137   :  { %456 = vsyncadd [#allocation5], 4294967232 }
 0x138   :  { %278 = vsyncpa [#allocation4], 1 }
 0x139   :  { %279 = vsyncpa [#allocation7], 1 }
 0x13a   :  { %280 = vsyncpa [#allocation10], 1 }
 0x13b   :  { %281 = vsyncpa [#allocation5], 1 }

</bundles_post_ra>
